<compile_context>
chip_gen: v7x
topology: tpu7x:2x2x1
jax: 0.10.0
libtpu: 0.0.40
codegen_flags: <defaults>
</compile_context>

<pallas_src>
import math
import functools

import jax
import jax.numpy as jnp
from jax import lax
from jax.experimental import pallas as pl
from jax.experimental.pallas import tpu as pltpu


def _mha_kernel(q_ref, k_ref, v_ref,
                wq_ref, bq_ref, wk_ref, bk_ref, wv_ref, bv_ref,
                wo_ref, bo_ref,
                o_ref, acc_ref, *, scale):
    h = pl.program_id(2)

    # Output block is resident across the head axis: seed the accumulator with
    # the output-projection bias on the first head step.
    @pl.when(h == 0)
    def _():
        acc_ref[...] = jnp.broadcast_to(bo_ref[...], acc_ref.shape).astype(jnp.float32)

    # bf16 operands into the MXU, f32 accumulation.
    xq = q_ref[...].astype(jnp.bfloat16)   # (tq, D)
    xk = k_ref[...].astype(jnp.bfloat16)   # (T,  D)
    xv = v_ref[...].astype(jnp.bfloat16)   # (T,  D)

    # Per-head input projections (weights arrive pre-transposed -> plain A @ B).
    q_h = jnp.dot(xq, wq_ref[...], preferred_element_type=jnp.float32) + bq_ref[...]  # (tq, d_k)
    k_h = jnp.dot(xk, wk_ref[...], preferred_element_type=jnp.float32) + bk_ref[...]  # (T,  d_k)
    v_h = jnp.dot(xv, wv_ref[...], preferred_element_type=jnp.float32) + bv_ref[...]  # (T,  d_k)

    # scores = q_h @ k_h.T without materializing a transposed copy of K.
    s = lax.dot_general(q_h.astype(jnp.bfloat16), k_h.astype(jnp.bfloat16),
                        (((1,), (1,)), ((), ())),
                        preferred_element_type=jnp.float32) * scale               # (tq, T)

    # Softmax in f32; denominator via the (free) EUP reciprocal.
    s = s - jnp.max(s, axis=-1, keepdims=True)
    p = jnp.exp(s)
    p = p * pl.reciprocal(jnp.sum(p, axis=-1, keepdims=True), approx=True)

    ctx = jnp.dot(p.astype(jnp.bfloat16), v_h.astype(jnp.bfloat16),
                  preferred_element_type=jnp.float32)                              # (tq, d_k)

    # Fused combine_heads + W_out: accumulate this head's slice of the output
    # projection (wo_ref is the (d_k, D) row block of W_out.T for this head).
    acc_ref[...] += jnp.dot(ctx.astype(jnp.bfloat16), wo_ref[...],
                            preferred_element_type=jnp.float32)                    # (tq, D)

    @pl.when(h == pl.num_programs(2) - 1)
    def _():
        o_ref[...] = acc_ref[...].astype(o_ref.dtype)


def _pick_tq(T):
    """Query-tile size: full T when small, else the largest 8-aligned divisor."""
    if T <= 256:
        return T
    for cand in (256, 128, 64, 32, 16, 8):
        if T % cand == 0:
            return cand
    return T


def multi_head_attention(Q, K, V, params, *, num_heads):
    """Q, K, V: (B, T, d_model). params: dict of W_Q/b_Q/.../W_out/b_out."""
    B, T, D = Q.shape
    assert D % num_heads == 0, "d_model must be divisible by num_heads"
    H = num_heads
    d_k = D // H
    scale = 1.0 / math.sqrt(d_k)

    # Host-side weight prep (done once): transpose + per-head split + bf16 cast.
    def split_cols(w):  # nn.Linear weight (D, D) -> (H, D, d_k), bf16
        return jnp.transpose(w.T.reshape(D, H, d_k), (1, 0, 2)).astype(jnp.bfloat16)

    wq = split_cols(params["W_Q"])
    wk = split_cols(params["W_K"])
    wv = split_cols(params["W_V"])
    wo = params["W_out"].T.reshape(H, d_k, D).astype(jnp.bfloat16)

    bq = params["b_Q"].reshape(H, 1, d_k).astype(jnp.float32)
    bk = params["b_K"].reshape(H, 1, d_k).astype(jnp.float32)
    bv = params["b_V"].reshape(H, 1, d_k).astype(jnp.float32)
    bo = params["b_out"].reshape(1, D).astype(jnp.float32)

    tq = _pick_tq(T)
    nq = T // tq

    sq = pl.Squeezed()
    q_spec   = pl.BlockSpec((sq, tq, D),   lambda b, qi, h: (b, qi, 0))
    kv_spec  = pl.BlockSpec((sq, T, D),    lambda b, qi, h: (b, 0, 0))
    wp_spec  = pl.BlockSpec((sq, D, d_k),  lambda b, qi, h: (h, 0, 0))
    bp_spec  = pl.BlockSpec((sq, 1, d_k),  lambda b, qi, h: (h, 0, 0))
    wo_spec  = pl.BlockSpec((sq, d_k, D),  lambda b, qi, h: (h, 0, 0))
    bo_spec  = pl.BlockSpec((1, D),        lambda b, qi, h: (0, 0))
    out_spec = pl.BlockSpec((sq, tq, D),   lambda b, qi, h: (b, qi, 0))

    # Explicit VMEM budget: double-buffered activation/weight blocks + scratch
    # + intermediates, 2x headroom, capped at v7x's 64 MiB physical VMEM.
    act_b = Q.dtype.itemsize
    vmem_est = (
        2 * (tq * D + 2 * T * D) * act_b      # q / k / v input blocks (x2 buffers)
        + 2 * (3 * D * d_k + d_k * D) * 2     # per-head bf16 weight blocks (x2 buffers)
        + 2 * tq * D * act_b                  # output block (x2 buffers)
        + tq * D * 4                          # f32 accumulator scratch
        + (tq * T + 2 * T * d_k + 2 * tq * d_k + tq * D) * 4  # f32 intermediates
        + (1 << 20)
    )
    vmem_limit = int(min(64 * 1024 * 1024, max(8 * 1024 * 1024, 2 * vmem_est)))

    kernel = functools.partial(_mha_kernel, scale=scale)

    return pl.pallas_call(
        kernel,
        out_shape=jax.ShapeDtypeStruct((B, T, D), Q.dtype),
        grid_spec=pltpu.PrefetchScalarGridSpec(
            num_scalar_prefetch=0,
            grid=(B, nq, H),
            in_specs=[q_spec, kv_spec, kv_spec,
                      wp_spec, bp_spec, wp_spec, bp_spec, wp_spec, bp_spec,
                      wo_spec, bo_spec],
            out_specs=out_spec,
            scratch_shapes=[pltpu.VMEM((tq, D), jnp.float32)],
        ),
        compiler_params=pltpu.CompilerParams(
            dimension_semantics=("parallel", "parallel", "arbitrary"),
            vmem_limit_bytes=vmem_limit,
        ),
    )(Q, K, V, wq, bq, wk, bk, wv, bv, wo, bo)


def _reference(Q, K, V, params, *, num_heads):
    """Pure-JAX f32 reference mirroring the (intended) PyTorch forward."""
    B, T, D = Q.shape
    d_k = D // num_heads

    def lin(x, w, b):
        return x @ w.T + b

    def split(x):  # (B, T, D) -> (B, H, T, d_k)
        return x.reshape(B, T, num_heads, d_k).transpose(0, 2, 1, 3)

    q = split(lin(Q, params["W_Q"], params["b_Q"]))
    k = split(lin(K, params["W_K"], params["b_K"]))
    v = split(lin(V, params["W_V"], params["b_V"]))

    scores = jnp.einsum("bhqd,bhkd->bhqk", q, k) / math.sqrt(d_k)
    p = jax.nn.softmax(scores, axis=-1)
    out = jnp.einsum("bhqk,bhkd->bhqd", p, v)
    out = out.transpose(0, 2, 1, 3).reshape(B, T, D)  # combine_heads
    return lin(out, params["W_out"], params["b_out"])


if __name__ == "__main__":
    B, T, D, H = 2, 8, 32, 4

    key = jax.random.PRNGKey(0)
    keys = jax.random.split(key, 12)
    scale = 1.0 / math.sqrt(D)
    params = {
        "W_Q":   jax.random.uniform(keys[0], (D, D), jnp.float32, -scale, scale),
        "b_Q":   jax.random.uniform(keys[1], (D,),   jnp.float32, -scale, scale),
        "W_K":   jax.random.uniform(keys[2], (D, D), jnp.float32, -scale, scale),
        "b_K":   jax.random.uniform(keys[3], (D,),   jnp.float32, -scale, scale),
        "W_V":   jax.random.uniform(keys[4], (D, D), jnp.float32, -scale, scale),
        "b_V":   jax.random.uniform(keys[5], (D,),   jnp.float32, -scale, scale),
        "W_out": jax.random.uniform(keys[6], (D, D), jnp.float32, -scale, scale),
        "b_out": jax.random.uniform(keys[7], (D,),   jnp.float32, -scale, scale),
    }

    Q = jax.random.normal(keys[8],  (B, T, D), jnp.float32)
    K = jax.random.normal(keys[9],  (B, T, D), jnp.float32)
    V = jax.random.normal(keys[10], (B, T, D), jnp.float32)

    out = multi_head_attention(Q, K, V, params, num_heads=H)
    out = jax.block_until_ready(out)

    ref = _reference(Q, K, V, params, num_heads=H)
    assert out.shape == (B, T, D)
    # bf16 MXU operands (f32 accumulation) vs an all-f32 reference -> looser tol.
    assert jnp.allclose(out, ref, atol=5e-2, rtol=5e-2), "mismatch vs reference"

    print("KERNEL_OK")
</pallas_src>

<mosaic_0001>
module attributes {stable_mosaic.version = 11 : i64} {
  func.func @_mha_kernel(%arg0: i32, %arg1: i32, %arg2: i32, %arg3: memref<1x8x32xf32, #tpu.memory_space<vmem>>, %arg4: memref<1x8x32xf32, #tpu.memory_space<vmem>>, %arg5: memref<1x8x32xf32, #tpu.memory_space<vmem>>, %arg6: memref<1x32x8xbf16, #tpu.memory_space<vmem>>, %arg7: memref<1x1x8xf32, #tpu.memory_space<vmem>>, %arg8: memref<1x32x8xbf16, #tpu.memory_space<vmem>>, %arg9: memref<1x1x8xf32, #tpu.memory_space<vmem>>, %arg10: memref<1x32x8xbf16, #tpu.memory_space<vmem>>, %arg11: memref<1x1x8xf32, #tpu.memory_space<vmem>>, %arg12: memref<1x8x32xbf16, #tpu.memory_space<vmem>>, %arg13: memref<1x32xf32, #tpu.memory_space<vmem>>, %arg14: memref<1x8x32xf32, #tpu.memory_space<vmem>>, %arg15: memref<8x32xf32, #tpu.memory_space<vmem>>) attributes {dimension_semantics = [#tpu.dimension_semantics<parallel>, #tpu.dimension_semantics<parallel>, #tpu.dimension_semantics<arbitrary>], iteration_bounds = array<i64: 2, 1, 4>, scalar_prefetch = 0 : i64, scratch_operands = 1 : i64, tpu.core_type = #tpu.core_type<tc>, window_params = [{transform_indices = @transform_0, window_bounds = array<i64: 1, 8, 32>}, {transform_indices = @transform_1, window_bounds = array<i64: 1, 8, 32>}, {transform_indices = @transform_2, window_bounds = array<i64: 1, 8, 32>}, {transform_indices = @transform_3, window_bounds = array<i64: 1, 32, 8>}, {transform_indices = @transform_4, window_bounds = array<i64: 1, 1, 8>}, {transform_indices = @transform_5, window_bounds = array<i64: 1, 32, 8>}, {transform_indices = @transform_6, window_bounds = array<i64: 1, 1, 8>}, {transform_indices = @transform_7, window_bounds = array<i64: 1, 32, 8>}, {transform_indices = @transform_8, window_bounds = array<i64: 1, 1, 8>}, {transform_indices = @transform_9, window_bounds = array<i64: 1, 8, 32>}, {pipeline_mode = #tpu.pipeline_mode<synchronous>, transform_indices = @transform_10, window_bounds = array<i64: 1, 32>}, {transform_indices = @transform_11, window_bounds = array<i64: 1, 8, 32>}]} {
    %c0_i32 = arith.constant 0 : i32
    %0 = arith.cmpi eq, %arg2, %c0_i32 : i32
    %1 = arith.extui %0 : i1 to i32
    %c0_i32_0 = arith.constant 0 : i32
    %2 = arith.cmpi ne, %1, %c0_i32_0 : i32
    scf.if %2 {
      %c0_43 = arith.constant 0 : index
      %c0_44 = arith.constant 0 : index
      %61 = vector.load %arg13[%c0_43, %c0_44] : memref<1x32xf32, #tpu.memory_space<vmem>>, vector<1x32xf32>
      %62 = vector.shape_cast %61 : vector<1x32xf32> to vector<1x32xf32>
      %63 = vector.broadcast %62 : vector<1x32xf32> to vector<8x32xf32>
      %c0_45 = arith.constant 0 : index
      %c0_46 = arith.constant 0 : index
      %64 = vector.load %arg15[%c0_45, %c0_46] : memref<8x32xf32, #tpu.memory_space<vmem>>, vector<8x32xf32>
      tpu.vector_store %arg15[%c0_45, %c0_46], %63 {strides = array<i32>} : memref<8x32xf32, #tpu.memory_space<vmem>>, vector<8x32xf32>,
    } else {
    }
    %c0 = arith.constant 0 : index
    %c0_1 = arith.constant 0 : index
    %c0_2 = arith.constant 0 : index
    %3 = vector.load %arg3[%c0, %c0_1, %c0_2] : memref<1x8x32xf32, #tpu.memory_space<vmem>>, vector<1x8x32xf32>
    %4 = vector.shape_cast %3 : vector<1x8x32xf32> to vector<8x32xf32>
    %5 = arith.truncf %4 : vector<8x32xf32> to vector<8x32xbf16>
    %c0_3 = arith.constant 0 : index
    %c0_4 = arith.constant 0 : index
    %c0_5 = arith.constant 0 : index
    %6 = vector.load %arg4[%c0_3, %c0_4, %c0_5] : memref<1x8x32xf32, #tpu.memory_space<vmem>>, vector<1x8x32xf32>
    %7 = vector.shape_cast %6 : vector<1x8x32xf32> to vector<8x32xf32>
    %8 = arith.truncf %7 : vector<8x32xf32> to vector<8x32xbf16>
    %c0_6 = arith.constant 0 : index
    %c0_7 = arith.constant 0 : index
    %c0_8 = arith.constant 0 : index
    %9 = vector.load %arg5[%c0_6, %c0_7, %c0_8] : memref<1x8x32xf32, #tpu.memory_space<vmem>>, vector<1x8x32xf32>
    %10 = vector.shape_cast %9 : vector<1x8x32xf32> to vector<8x32xf32>
    %11 = arith.truncf %10 : vector<8x32xf32> to vector<8x32xbf16>
    %c0_9 = arith.constant 0 : index
    %c0_10 = arith.constant 0 : index
    %c0_11 = arith.constant 0 : index
    %12 = vector.load %arg6[%c0_9, %c0_10, %c0_11] : memref<1x32x8xbf16, #tpu.memory_space<vmem>>, vector<1x32x8xbf16>
    %13 = vector.shape_cast %12 : vector<1x32x8xbf16> to vector<32x8xbf16>
    %cst = arith.constant dense<0.000000e+00> : vector<8x8xf32>
    %14 = tpu.matmul %5, %13, %cst {dimension_numbers = #tpu.dot_dimension_numbers<[1], [0], [0], [1], [0, 0, 1, 1], [], []>} : vector<8x32xbf16>, vector<32x8xbf16>, vector<8x8xf32> -> vector<8x8xf32>
    %c0_12 = arith.constant 0 : index
    %c0_13 = arith.constant 0 : index
    %c0_14 = arith.constant 0 : index
    %15 = vector.load %arg7[%c0_12, %c0_13, %c0_14] : memref<1x1x8xf32, #tpu.memory_space<vmem>>, vector<1x1x8xf32>
    %16 = vector.shape_cast %15 : vector<1x1x8xf32> to vector<1x8xf32>
    %17 = vector.broadcast %16 : vector<1x8xf32> to vector<8x8xf32>
    %18 = arith.addf %14, %17 : vector<8x8xf32>
    %c0_15 = arith.constant 0 : index
    %c0_16 = arith.constant 0 : index
    %c0_17 = arith.constant 0 : index
    %19 = vector.load %arg8[%c0_15, %c0_16, %c0_17] : memref<1x32x8xbf16, #tpu.memory_space<vmem>>, vector<1x32x8xbf16>
    %20 = vector.shape_cast %19 : vector<1x32x8xbf16> to vector<32x8xbf16>
    %cst_18 = arith.constant dense<0.000000e+00> : vector<8x8xf32>
    %21 = tpu.matmul %8, %20, %cst_18 {dimension_numbers = #tpu.dot_dimension_numbers<[1], [0], [0], [1], [0, 0, 1, 1], [], []>} : vector<8x32xbf16>, vector<32x8xbf16>, vector<8x8xf32> -> vector<8x8xf32>
    %c0_19 = arith.constant 0 : index
    %c0_20 = arith.constant 0 : index
    %c0_21 = arith.constant 0 : index
    %22 = vector.load %arg9[%c0_19, %c0_20, %c0_21] : memref<1x1x8xf32, #tpu.memory_space<vmem>>, vector<1x1x8xf32>
    %23 = vector.shape_cast %22 : vector<1x1x8xf32> to vector<1x8xf32>
    %24 = vector.broadcast %23 : vector<1x8xf32> to vector<8x8xf32>
    %25 = arith.addf %21, %24 : vector<8x8xf32>
    %c0_22 = arith.constant 0 : index
    %c0_23 = arith.constant 0 : index
    %c0_24 = arith.constant 0 : index
    %26 = vector.load %arg10[%c0_22, %c0_23, %c0_24] : memref<1x32x8xbf16, #tpu.memory_space<vmem>>, vector<1x32x8xbf16>
    %27 = vector.shape_cast %26 : vector<1x32x8xbf16> to vector<32x8xbf16>
    %cst_25 = arith.constant dense<0.000000e+00> : vector<8x8xf32>
    %28 = tpu.matmul %11, %27, %cst_25 {dimension_numbers = #tpu.dot_dimension_numbers<[1], [0], [0], [1], [0, 0, 1, 1], [], []>} : vector<8x32xbf16>, vector<32x8xbf16>, vector<8x8xf32> -> vector<8x8xf32>
    %c0_26 = arith.constant 0 : index
    %c0_27 = arith.constant 0 : index
    %c0_28 = arith.constant 0 : index
    %29 = vector.load %arg11[%c0_26, %c0_27, %c0_28] : memref<1x1x8xf32, #tpu.memory_space<vmem>>, vector<1x1x8xf32>
    %30 = vector.shape_cast %29 : vector<1x1x8xf32> to vector<1x8xf32>
    %31 = vector.broadcast %30 : vector<1x8xf32> to vector<8x8xf32>
    %32 = arith.addf %28, %31 : vector<8x8xf32>
    %33 = arith.truncf %18 : vector<8x8xf32> to vector<8x8xbf16>
    %34 = arith.truncf %25 : vector<8x8xf32> to vector<8x8xbf16>
    %cst_29 = arith.constant dense<0.000000e+00> : vector<8x8xf32>
    %35 = tpu.matmul %33, %34, %cst_29 {dimension_numbers = #tpu.dot_dimension_numbers<[1], [1], [0], [0], [0, 0, 1, 0], [], []>} : vector<8x8xbf16>, vector<8x8xbf16>, vector<8x8xf32> -> vector<8x8xf32>
    %cst_30 = arith.constant 0.353553385 : f32
    %36 = vector.broadcast %cst_30 : f32 to vector<8x8xf32>
    %37 = arith.mulf %35, %36 : vector<8x8xf32>
    %cst_31 = arith.constant dense<0xFF800000> : vector<8xf32>
    %38 = vector.multi_reduction <maximumf>, %37, %cst_31 [1] : vector<8x8xf32> to vector<8xf32>
    %39 = vector.shape_cast %38 : vector<8xf32> to vector<8x1xf32>
    %40 = vector.broadcast %39 : vector<8x1xf32> to vector<8x8xf32>
    %41 = arith.subf %37, %40 : vector<8x8xf32>
    %42 = math.exp %41 : vector<8x8xf32>
    %cst_32 = arith.constant dense<0.000000e+00> : vector<8xf32>
    %43 = vector.multi_reduction <add>, %42, %cst_32 [1] : vector<8x8xf32> to vector<8xf32>
    %44 = vector.shape_cast %43 : vector<8xf32> to vector<8x1xf32>
    %45 = tpu.reciprocal %44 {approx = true} : vector<8x1xf32> -> vector<8x1xf32>
    %46 = vector.broadcast %45 : vector<8x1xf32> to vector<8x8xf32>
    %47 = arith.mulf %42, %46 : vector<8x8xf32>
    %48 = arith.truncf %47 : vector<8x8xf32> to vector<8x8xbf16>
    %49 = arith.truncf %32 : vector<8x8xf32> to vector<8x8xbf16>
    %cst_33 = arith.constant dense<0.000000e+00> : vector<8x8xf32>
    %50 = tpu.matmul %48, %49, %cst_33 {dimension_numbers = #tpu.dot_dimension_numbers<[1], [0], [0], [1], [0, 0, 1, 1], [], []>} : vector<8x8xbf16>, vector<8x8xbf16>, vector<8x8xf32> -> vector<8x8xf32>
    %c0_34 = arith.constant 0 : index
    %c0_35 = arith.constant 0 : index
    %51 = vector.load %arg15[%c0_34, %c0_35] : memref<8x32xf32, #tpu.memory_space<vmem>>, vector<8x32xf32>
    %52 = arith.truncf %50 : vector<8x8xf32> to vector<8x8xbf16>
    %c0_36 = arith.constant 0 : index
    %c0_37 = arith.constant 0 : index
    %c0_38 = arith.constant 0 : index
    %53 = vector.load %arg12[%c0_36, %c0_37, %c0_38] : memref<1x8x32xbf16, #tpu.memory_space<vmem>>, vector<1x8x32xbf16>
    %54 = vector.shape_cast %53 : vector<1x8x32xbf16> to vector<8x32xbf16>
    %cst_39 = arith.constant dense<0.000000e+00> : vector<8x32xf32>
    %55 = tpu.matmul %52, %54, %cst_39 {dimension_numbers = #tpu.dot_dimension_numbers<[1], [0], [0], [1], [0, 0, 1, 1], [], []>} : vector<8x8xbf16>, vector<8x32xbf16>, vector<8x32xf32> -> vector<8x32xf32>
    %56 = arith.addf %51, %55 : vector<8x32xf32>
    %c0_40 = arith.constant 0 : index
    %c0_41 = arith.constant 0 : index
    %57 = vector.load %arg15[%c0_40, %c0_41] : memref<8x32xf32, #tpu.memory_space<vmem>>, vector<8x32xf32>
    tpu.vector_store %arg15[%c0_40, %c0_41], %56 {strides = array<i32>} : memref<8x32xf32, #tpu.memory_space<vmem>>, vector<8x32xf32>,
    %c3_i32 = arith.constant 3 : i32
    %58 = arith.cmpi eq, %arg2, %c3_i32 : i32
    %59 = arith.extui %58 : i1 to i32
    %c0_i32_42 = arith.constant 0 : i32
    %60 = arith.cmpi ne, %59, %c0_i32_42 : i32
    scf.if %60 {
      %c0_43 = arith.constant 0 : index
      %c0_44 = arith.constant 0 : index
      %61 = vector.load %arg15[%c0_43, %c0_44] : memref<8x32xf32, #tpu.memory_space<vmem>>, vector<8x32xf32>
      %c0_45 = arith.constant 0 : index
      %c0_46 = arith.constant 0 : index
      %c0_47 = arith.constant 0 : index
      %62 = vector.load %arg14[%c0_45, %c0_46, %c0_47] : memref<1x8x32xf32, #tpu.memory_space<vmem>>, vector<1x8x32xf32>
      %63 = vector.shape_cast %62 : vector<1x8x32xf32> to vector<8x32xf32>
      %64 = vector.shape_cast %61 : vector<8x32xf32> to vector<1x8x32xf32>
      tpu.vector_store %arg14[%c0_45, %c0_46, %c0_47], %64 {strides = array<i32>} : memref<1x8x32xf32, #tpu.memory_space<vmem>>, vector<1x8x32xf32>,
    } else {
    }
    return
  }
  func.func @transform_0(%arg0: i32, %arg1: i32, %arg2: i32) -> (i32, i32, i32) {
    %c0_i32 = arith.constant 0 : i32
    %c0_i32_0 = arith.constant 0 : i32
    return %arg0, %arg1, %c0_i32 : i32, i32, i32
  }
  func.func @transform_1(%arg0: i32, %arg1: i32, %arg2: i32) -> (i32, i32, i32) {
    %c0_i32 = arith.constant 0 : i32
    %c0_i32_0 = arith.constant 0 : i32
    %c0_i32_1 = arith.constant 0 : i32
    return %arg0, %c0_i32, %c0_i32_0 : i32, i32, i32
  }
  func.func @transform_2(%arg0: i32, %arg1: i32, %arg2: i32) -> (i32, i32, i32) {
    %c0_i32 = arith.constant 0 : i32
    %c0_i32_0 = arith.constant 0 : i32
    %c0_i32_1 = arith.constant 0 : i32
    return %arg0, %c0_i32, %c0_i32_0 : i32, i32, i32
  }
  func.func @transform_3(%arg0: i32, %arg1: i32, %arg2: i32) -> (i32, i32, i32) {
    %c0_i32 = arith.constant 0 : i32
    %c0_i32_0 = arith.constant 0 : i32
    %c0_i32_1 = arith.constant 0 : i32
    return %arg2, %c0_i32, %c0_i32_0 : i32, i32, i32
  }
  func.func @transform_4(%arg0: i32, %arg1: i32, %arg2: i32) -> (i32, i32, i32) {
    %c0_i32 = arith.constant 0 : i32
    %c0_i32_0 = arith.constant 0 : i32
    %c0_i32_1 = arith.constant 0 : i32
    return %arg2, %c0_i32, %c0_i32_0 : i32, i32, i32
  }
  func.func @transform_5(%arg0: i32, %arg1: i32, %arg2: i32) -> (i32, i32, i32) {
    %c0_i32 = arith.constant 0 : i32
    %c0_i32_0 = arith.constant 0 : i32
    %c0_i32_1 = arith.constant 0 : i32
    return %arg2, %c0_i32, %c0_i32_0 : i32, i32, i32
  }
  func.func @transform_6(%arg0: i32, %arg1: i32, %arg2: i32) -> (i32, i32, i32) {
    %c0_i32 = arith.constant 0 : i32
    %c0_i32_0 = arith.constant 0 : i32
    %c0_i32_1 = arith.constant 0 : i32
    return %arg2, %c0_i32, %c0_i32_0 : i32, i32, i32
  }
  func.func @transform_7(%arg0: i32, %arg1: i32, %arg2: i32) -> (i32, i32, i32) {
    %c0_i32 = arith.constant 0 : i32
    %c0_i32_0 = arith.constant 0 : i32
    %c0_i32_1 = arith.constant 0 : i32
    return %arg2, %c0_i32, %c0_i32_0 : i32, i32, i32
  }
  func.func @transform_8(%arg0: i32, %arg1: i32, %arg2: i32) -> (i32, i32, i32) {
    %c0_i32 = arith.constant 0 : i32
    %c0_i32_0 = arith.constant 0 : i32
    %c0_i32_1 = arith.constant 0 : i32
    return %arg2, %c0_i32, %c0_i32_0 : i32, i32, i32
  }
  func.func @transform_9(%arg0: i32, %arg1: i32, %arg2: i32) -> (i32, i32, i32) {
    %c0_i32 = arith.constant 0 : i32
    %c0_i32_0 = arith.constant 0 : i32
    %c0_i32_1 = arith.constant 0 : i32
    return %arg2, %c0_i32, %c0_i32_0 : i32, i32, i32
  }
  func.func @transform_10(%arg0: i32, %arg1: i32, %arg2: i32) -> (i32, i32) {
    %c0_i32 = arith.constant 0 : i32
    %c0_i32_0 = arith.constant 0 : i32
    %c0_i32_1 = arith.constant 0 : i32
    return %c0_i32, %c0_i32_0 : i32, i32
  }
  func.func @transform_11(%arg0: i32, %arg1: i32, %arg2: i32) -> (i32, i32, i32) {
    %c0_i32 = arith.constant 0 : i32
    %c0_i32_0 = arith.constant 0 : i32
    return %arg0, %arg1, %c0_i32 : i32, i32, i32
  }
}

</mosaic_0001>

<bundles_post_ra>
// kernel: tpu_custom_call.1
= control target key start
LH: loop header
LB: loop body
LE: loop exit
PB: predicated region body
PF: predicated region fallthrough
CT: control target
= control target key end

     0   :  { %s1716_s0 = inlined_call_operand.vmem [shape: f32[2,8,32], index: 0, kind: input, shape index: {}]   ;;  %s1717_s1 = inlined_call_operand.vmem [shape: f32[2,8,32], index: 1, kind: input, shape index: {}]   ;;  %s1718_s2 = inlined_call_operand.vmem [shape: f32[2,8,32], index: 2, kind: input, shape index: {}]   ;;  %s1719_s3 = inlined_call_operand.vmem [shape: bf16[4,32,8], index: 3, kind: input, shape index: {}]   ;;  %s1720_s4 = inlined_call_operand.vmem [shape: f32[4,1,8], index: 4, kind: input, shape index: {}]   ;;  %s1721_s5 = inlined_call_operand.vmem [shape: bf16[4,32,8], index: 5, kind: input, shape index: {}]   ;;  %s1722_s6 = inlined_call_operand.vmem [shape: f32[4,1,8], index: 6, kind: input, shape index: {}]   ;;  %s1723_s7 = inlined_call_operand.vmem [shape: bf16[4,32,8], index: 7, kind: input, shape index: {}]   ;;  %s1724_s8 = inlined_call_operand.vmem [shape: f32[4,1,8], index: 8, kind: input, shape index: {}]   ;;  %s1725_s9 = inlined_call_operand.vmem [shape: bf16[4,8,32], index: 9, kind: input, shape index: {}]   ;;  %s1726_s10 = inlined_call_operand.vmem [shape: f32[1,32], index: 10, kind: input, shape index: {}]   ;;  %s1727_s11 = inlined_call_operand.hbm [shape: f32[2,8,32], index: 11, kind: output, shape index: {}]  }
   0x1   :  { %1742 = sst [smem:[#allocation18_spill]] %s1716_s0 }
   0x2   :  { %1743 = sst [smem:[#allocation19_spill]] %s1717_s1 }
   0x3   :  { %1744 = sst [smem:[#allocation20_spill]] %s1719_s3 }
   0x4   :  { %1745 = sst [smem:[#allocation21_spill]] %s1727_s11 }
   0x5   :  { %16 = vsyncpa [#allocation4], 0 }
   0x6   :  { %18 = vsyncpa [#allocation4 + $0x1], 0  ;;  %s1484_s17 = smov 0   ;;  %s1486_s18 = smov 0  }
   0x7   :  { %s1488_s19 = smov 0   ;;  %s1490_s20 = smov 0  }
   0x8   :  { %s1492_s21 = smov 0   ;;  %s1494_s22 = smov 0  }
   0x9   :  { %s1496_s23 = smov 0   ;;  %s1498_s24 = smov 0  }
   0xa LB: > { %1746 = sst [smem:[#allocation6_spill]] %s1391_s17  ;;  %s1144_s25 = sadd.s32 4294967295, %s1419_s24   ;;  %s1419_s24 = sphi %s1498_s24, %s24_s24   ;;  %s1415_s23 = sphi %s1496_s23, %s1781_s23   ;;  %s1411_s22 = sphi %s1494_s22, %s1780_s22   ;;  %s1407_s21 = sphi %s1492_s21, %s1779_s21   ;;  %s1403_s20 = sphi %s1490_s20, %s1778_s20   ;;  %s1399_s19 = sphi %s1488_s19, %s1777_s19   ;;  %s1395_s18 = sphi %s1486_s18, %s1776_s18   ;;  %s1391_s17 = sphi %s1484_s17, %s1775_s17  }
   0xb   : > { %1747 = sst [smem:[#allocation7_spill]] %s1395_s18  ;;  %s1145_s26 = sadd.s32 4294967294, %s1419_s24  }
   0xc   : > { %1748 = sst [smem:[#allocation8_spill]] %s1399_s19  ;;  %s36_s27 = sadd.s32 1, %s1411_s22 }
   0xd   : > { %1749 = sst [smem:[#allocation9_spill]] %s1407_s21  ;;  %p37_p0 = scmp.ge.s32.totalorder %s36_s27, 4 }
   0xe   : > { %1750 = sst [smem:[#allocation10_spill]] %s1411_s22  ;;  %s43_s28 = sadd.s32 1, %s1415_s23 }
   0xf   : > { %1751 = sst [smem:[#allocation11_spill]] %s1415_s23  ;;  %p345_p1 = scmp.ne.s32.totalorder %s1399_s19, %s1395_s18 }
  0x10   : > { %1752 = sst [smem:[#allocation12_spill]] %s1419_s24  ;;  %p346_p2 = scmp.eq.s32.totalorder %s1144_s25, 7 }
  0x11   : > { %s1783_s27 = smov (%p37_p0, %s36_s27), 0  ;;  %s1785_s28 = smov (!%p37_p0, %s43_s28), %s1415_s23 }
  0x12   : > { %1753 = sst [smem:[#allocation13_spill]] %s1783_s27  ;;  %p1533_p3 = por %p346_p2, %p345_p1 }
  0x13   : > { %p351_p4 = scmp.ne.s32.totalorder %s1395_s18, %s1391_s17  ;;  %p45_p5 = scmp.ge.s32.totalorder %s1785_s28, 2 }
  0x14   : > { %s1754_s29 = scalar_select %p1533_p3, 1, 0 }
  0x15   : > { %p352_p6 = scmp.eq.s32.totalorder %s1145_s26, 7  ;;  %p1148_p7 = scmp.ge.s32.totalorder %s1419_s24, 1 }
  0x16   : > { %1755 = sst [smem:[#allocation14_spill]] %s1754_s29  ;;  %p446_p8 = scmp.lt.s32.totalorder %s1419_s24, 9 }
  0x17   : > { %s1787_s28 = smov (%p45_p5, %s1785_s28), 0  ;;  %p1543_p9 = por %p352_p6, %p351_p4 }
  0x18   : > { %1756 = sst [smem:[#allocation15_spill]] %s1787_s28  ;;  %p447_p10 = pnand %p1148_p7, %p446_p8 }
  0x19   : > { %s1757_s30 = scalar_select %p1543_p9, 1, 0 }
  0x1a   : > { %s330_s12 = ssub.s32 %s1415_s23, %s1787_s28  ;;  %s335_s13 = sadd.s32 1, %s1399_s19 }
  0x1b   : > { %1758 = sst [smem:[#allocation16_spill]] %s1757_s30  ;;  %p333_p11 = scmp.eq.s32.totalorder %s330_s12, 0 }
  0x1c   : > { %450 = sbr.rel (%p447_p10) target bundleno = 1275 (0x4fb), region = 64  ;;  %s1729_s15 = sand.u32 (!%p447_p10), 1, %s1395_s18  }
  0x1d   : > { %s1551_s14 = scalar_select %p333_p11, %s1399_s19, %s335_s13  }
  0x1e   : > { %p524_p12 = scmp.lt.s32.totalorder (!%p447_p10), %s1407_s21, 1  ;;  %s1557_s16 = sshll.u32 (!%p447_p10), %s1729_s15, 3 }
  0x1f   : > { %1759 = sst [smem:[#allocation17_spill]] %s1551_s14  ;;  %p539_p13 = scmp.lt.s32.totalorder (!%p447_p10), %s1403_s20, 3 }
  0x20   : > { %s1761_s1 = sld [smem:[#allocation19_spill]] (!%p447_p10)  ;;  %s1762_s3 = sld [smem:[#allocation20_spill]] (!%p447_p10) }
  0x21   : > { %p1160_p0 = scmp.ne.s32.totalorder (!%p447_p10), %s1403_s20, 0 }
  0x23   : > { %s525_s25 = scalar_select %p524_p12, %s1407_s21, 1 }
  0x24   : > { %s1562_s26 = scalar_select %p539_p13, %s1403_s20, 3 }
  0x25   : > { %s1564_s12 = sshll.u32 %s525_s25, 3  ;;  %s523_s21 = scalar_lea.vmem [#allocation3], %s1557_s16  ;;  %v1161_v0 = vld [vmem:[%s1726_s10] ss:$0 sm:$0xff] (!%p1160_p0)  ;;  %vm579_vm0 = vcmask (!%p1160_p0), 261120  }
  0x26   : > { %s534_s22 = scalar_lea.vmem %s1761_s1, %s1564_s12  ;;  %s1182_s17 = sshll.u32 %s1562_s26, 4  ;;  %580 = vst.msk [vmem:[#allocation2] sm:$0xff] (!%p1160_p0), %vm579_vm0, %v1161_v0 }
  0x27   : > { %s543_s25 = scalar_lea.vmem %s1762_s3, %s1182_s17  ;;  %s551_s15 = scalar_lea.vmem %s1721_s5, %s1182_s17 }
  0x28   : > { %s554_s27 = scalar_lea.vmem %s1722_s6, %s1562_s26  ;;  %s1596_s14 = scalar_lea.vmem %s1723_s7, %s1182_s17 }
  0x29   : > { %s562_s24 = scalar_lea.vmem %s1724_s8, %s1562_s26  ;;  %s1159_s3 = sshll.u32 %s1562_s26, 2 }
  0x2a   : > { %s1606_s28 = scalar_lea.vmem %s1725_s9, %s1159_s3  ;;  %571 = sbr.rel (%p1160_p0) target bundleno = 49 (0x31), region = 68 }
  0x31 PF: > { %v1315_v1 = vld [vmem:[%s551_s15] sm:$0xff]   ;;  %v1421_v2 = vmov 0.0   ;;  %v1316_v3 = vld [vmem:[%s551_s15 + $0x8] sm:$0xff]   ;;  %vm1422_vm1 = vmmov 0   ;;  %s1763_s17 = sld [smem:[#allocation18_spill]]  ;;  %vm610_vm2 = vcmask 261120   ;;  %s1765_s19 = scalar_lea.vmem %s1720_s4, %s1562_s26 }
  0x32   : > { %1208 = vmatprep.subr.bf16.mxu1 %v1421_v2  ;;  %1200 = vmatprep.subr.bf16.mxu0 %v1421_v2  ;;  %v1317_v4 = vld [vmem:[%s543_s25] sm:$0xff]   ;;  %v1318_v6 = vld [vmem:[%s543_s25 + $0x8] sm:$0xff]   ;;  %vm788_vm3 = vcmask 64512   ;;  %s1766_s18 = scalar_lea.vmem %s1718_s2, %s1564_s12  ;;  %vm852_vm4 = vcmask 1043456   ;;  %p1177_p1 = scmp.ne.s32.totalorder %s1403_s20, 3 }
  0x33   : > { %1209 = vmatpush3.bf16.msra.mxu1 %v1315_v1  ;;  %1212 = vmatprep.mubr.msk.bf16.mxu1 %vm1422_vm1, %v1421_v2  ;;  %v583_v5 = vld [vmem:[%s534_s22] sm:$0xff]  ;;  %v1320_v26 = vld [vmem:[%s1596_s14 + $0x8] sm:$0xff]  }
  0x34   : > { %1210 = vmatprep.subr.bf16.mxu1 %v1421_v2  ;;  %1204 = vmatprep.mubr.msk.bf16.mxu0 %vm1422_vm1, %v1421_v2  ;;  %v584_v8 = vpack.c.bf16 %v583_v5, %v583_v5  ;;  %v1166_v10 = vld [vmem:[%s554_s27] ss:$0 sm:$0xff] }
  0x35   : > { %1201 = vmatpush3.bf16.msra.mxu0 %v1317_v4  ;;  %v1162_v15 = vld [vmem:[%s1765_s19] ss:$0 sm:$0xff] }
  0x36   : > { %1202 = vmatprep.subr.bf16.mxu0 %v1421_v2  ;;  %v1319_v25 = vld [vmem:[%s1596_s14] sm:$0xff]  }
  0x37   : > { %s1764_s30 = scalar_lea.vmem %s1763_s17, %s1564_s12  ;;  %1211 = vmatpush3.bf16.msra.mxu1 %v1316_v3  ;;  %v585_v27 = vld [vmem:[%s1766_s18] sm:$0xff] }
  0x38   : > { %v581_v7 = vld [vmem:[%s1764_s30] sm:$0xff]  ;;  %1224 = vmatprep.subr.bf16.mxu1 %v1421_v2  ;;  %v586_v28 = vpack.c.bf16 %v585_v27, %v585_v27 }
  0x39   : > { %v582_v9 = vpack.c.bf16 %v581_v7, %v581_v7  ;;  %1203 = vmatpush3.bf16.msra.mxu0 %v1318_v6  ;;  %v1170_v43 = vld [vmem:[%s562_s24] ss:$0 sm:$0xff] }
  0x3a   : > { %1213 = vmatmul.mubr.msk.bf16.vlgmr.msra.gmra.mrb[0].mxu1 %vm610_vm2, %v584_v8  ;;  %1216 = vmatprep.subr.bf16.mxu0 %v1421_v2  ;;  %v898_v48 = vld [vmem:[%s1606_s28] sm:$0xf] }
  0x3b   : > { %1226 = vmatprep.mubr.msk.bf16.mxu1 %vm1422_vm1, %v1421_v2  ;;  %v903_v49 = vsel %vm852_vm4, %v898_v48, 0  ;;  %v896_v59 = vld [vmem:[#allocation2] sm:$0xff] }
  0x3c   : > { %1205 = vmatmul.mubr.msk.bf16.vlgmr.msra.gmra.mrb[0].mxu0 %vm610_vm2, %v582_v9 }
  0x3d   : > { %1220 = vmatprep.mubr.msk.bf16.mxu0 %vm1422_vm1, %v1421_v2  ;;  %1217 = vmatpush3.bf16.msra.mxu0 %v1319_v25 }
  0x3e   : > { %1218 = vmatprep.subr.bf16.mxu0 %v1421_v2 }
  0x41   : > { %1219 = vmatpush3.bf16.msra.mxu0 %v1320_v26 }
  0x42   : > { %1230 = vmatprep.subr.bf16.mxu0 %v1421_v2 }
  0x44   : > { %1221 = vmatmul.mubr.msk.bf16.vlgmr.msra.gmra.mrb[4].mxu0 %vm610_vm2, %v586_v28 }
  0x45   : > { %1232 = vmatprep.mubr.msk.bf16.mxu0 %vm1422_vm1, %v1421_v2 }
 0x10d   : > { %v714_v11 = vpop.f32.mrb[0].mxu1 }
 0x10e   : > { %v715_v12 = vadd.f32 %v1166_v10, %v714_v11  ;;  %v1214_v13 = vpop.f32.mrb[1].mxu1 }
 0x10f   : > { %v717_v14 = vpop.f32.mrb[2].mxu1  ;;  %v648_v16 = vpop.f32.mrb[0].mxu0 }
 0x110   : > { %v787_v17 = vpack.c.bf16 %v715_v12, %v715_v12  ;;  %v1215_v18 = vpop.f32.mrb[3].mxu1  ;;  %v1206_v19 = vpop.f32.mrb[1].mxu0  ;;  %v649_v22 = vadd.f32 %v1162_v15, %v648_v16 }
 0x111   : > { %v651_v20 = vpop.f32.mrb[2].mxu0 }
 0x112   : > { %v793_v21 = vsel %vm788_vm3, %v787_v17, 0  ;;  %v1207_v23 = vpop.f32.mrb[3].mxu0  ;;  %v786_v24 = vpack.c.bf16 %v649_v22, %v649_v22 }
 0x113   : > { %1225 = vmatpush3.bf16.xpose.msra.mxu1 %v793_v21 }
 0x114   : > { %1236 = vmatprep.subr.bf16.mxu1 %v1421_v2 }
 0x117   : > { %v780_v40 = vpop.f32.mrb[4].mxu0 }
 0x118   : > { %v1222_v41 = vpop.f32.mrb[5].mxu0  ;;  %v781_v45 = vadd.f32 %v1170_v43, %v780_v40 }
 0x119   : > { %v783_v42 = vpop.f32.mrb[6].mxu0 }
 0x11a   : > { %1227 = vmatmul.mubr.msk.bf16.vlgmr.msra.gmra.mrb[4].mxu1 %vm788_vm3, %v786_v24  ;;  %v1223_v44 = vpop.f32.mrb[7].mxu0  ;;  %v848_v46 = vpack.c.bf16 %v781_v45, %v781_v45 }
 0x11b   : > { %1238 = vmatprep.mubr.msk.bf16.mxu1 %vm1422_vm1, %v1421_v2  ;;  %1237 = vmatpush3.bf16.msra.mxu1 %v903_v49 }
 0x11c   : > { %v854_v47 = vsel %vm852_vm4, %v848_v46, 0 }
 0x11d   : > { %1231 = vmatpush3.bf16.msra.mxu0 %v854_v47 }
 0x1ed   : > { %v829_v29 = vpop.f32.mrb[4].mxu1 }
 0x1ee   : > { %v835_v30 = vmul.f32 0.35355338, %v829_v29  ;;  %v1228_v31 = vpop.f32.mrb[5].mxu1 }
 0x1ef   : > { %v832_v32 = vpop.f32.mrb[6].mxu1 }
 0x1f0   : > { %v1229_v33 = vpop.f32.mrb[7].mxu1  ;;  %v836_v34 = vsel %vm788_vm3, %v835_v30, -inf }
 0x1f1   : > { %837 = vmax.xlane.f32.xlu0 %v836_v34 }
 0x27e   : > { %v838_v35 = vpop.xlane.xlu0 %837 }
 0x27f   : > { %v839_v36 = vsub.f32 %v835_v30, %v838_v35 }
 0x281   : > { %v840_v37 = vmul.f32 1.442695, %v839_v36 }
 0x283   : > { %1321 = vpow2.f32 %v840_v37 }
 0x28d   : > { %v1322_v38 = vpop.eup %1321 }
 0x28e   : > { %v842_v39 = vsel %vm788_vm3, %v1322_v38, 0.0 }
 0x28f   : > { %843 = vadd.xlane.f32.xlu0 %v842_v39 }
 0x31c   : > { %v844_v50 = vpop.xlane.xlu0 %843 }
 0x31d   : > { %1323 = vrcp.f32 %v844_v50 }
 0x327   : > { %v1324_v51 = vpop.eup %1323 }
 0x328   : > { %v846_v52 = vmul.f32 %v1324_v51, %v1322_v38 }
 0x32a   : > { %v847_v53 = vpack.c.bf16 %v846_v52, %v846_v52 }
 0x32c   : > { %1233 = vmatmul.mubr.msk.bf16.vlgmr.msra.gmra.mrb[8].mxu0 %vm788_vm3, %v847_v53 }
 0x3ff   : > { %v890_v54 = vpop.f32.mrb[8].mxu0 }
 0x400   : > { %v897_v55 = vpack.c.bf16 %v890_v54, %v890_v54  ;;  %v1234_v56 = vpop.f32.mrb[9].mxu0 }
 0x401   : > { %v893_v57 = vpop.f32.mrb[10].mxu0 }
 0x402   : > { %v1235_v58 = vpop.f32.mrb[11].mxu0  ;;  %1239 = vmatmul.mubr.msk.bf16.vlgmr.msra.gmra.mrb[8].mxu1 %vm788_vm3, %v897_v55 }
 0x4d2   : > { %950 = sbr.rel (%p1177_p1) target bundleno = 1249 (0x4e1), region = 72 }
 0x4d5   : > { %v939_v60 = vpop.f32.mrb[8].mxu1 }
 0x4d6   : > { %v945_v61 = vadd.f32 %v939_v60, %v896_v59  ;;  %v1240_v62 = vpop.f32.mrb[9].mxu1 }
 0x4d7   : > { %v942_v63 = vpop.f32.mrb[10].mxu1 }
 0x4d8   : > { %946 = vst.msk [vmem:[#allocation2] sm:$0xff] %vm610_vm2, %v945_v61  ;;  %v1241_v0 = vpop.f32.mrb[11].mxu1 }
 0x4df   : > { %v951_v1 = vld [vmem:[#allocation2] sm:$0xff] }
 0x4e0   : > { %952 = vst.msk [vmem:[%s523_s21] sm:$0xff] %vm610_vm2, %v951_v1 }
 0x4e1 PF: > { %s1767_s26 = sld [smem:[#allocation9_spill]]  ;;  %s1770_s1 = sld [smem:[#allocation21_spill]] }
 0x4e2   : > { %s1768_s28 = sld [smem:[#allocation7_spill]]  ;;  %s968_s17 = sshll.u32 %s523_s21, 4  ;;  %s969_s17 = int_to_ptr.vmem [resolvable:$true] %s968_s17 }
 0x4e3   : > { %s1325_s22 = scalar_lea.vmem %s969_s17, 128  ;;  %s1423_s15 = smov [#allocation3]  }
 0x4e4   : > { %p1326_p2 = scmp.ne.s32.totalorder %s969_s17, %s1325_s22  ;;  %s1329_s25 = sshll.u32 %s1423_s15, 4  ;;  %s1330_s25 = int_to_ptr.vmem [resolvable:$false] %s1329_s25 }
 0x4e5   : > { %s1331_s23 = scalar_lea.vmem %s1330_s25, 256  ;;  %p1332_p6 = scmp.lt.s32.totalorder %s969_s17, %s1330_s25 }
 0x4e6   : > { %p1327_p4 = pnand %p1326_p2, %p1533_p3  ;;  %p1333_p7 = scmp.lt.s32.totalorder %s1331_s23, %s1325_s22 }
 0x4e7   : > { %s1179_s29 = sshll.u32 %s1767_s26, 7 }
 0x4e8   : > { %s1665_s3 = scalar_lea.hbm %s1770_s1, %s1179_s29  ;;  %s1771_s20 = sand.u32 1, %s1768_s28  }
 0x4e9   : > { %s954_s30 = scalar_lea.sflag [#allocation4], %s1771_s20  ;;  %p1328_p5 = pneg %p1327_p4 }
 0x4ea   : > { %p1334_p8 = por %p1333_p7, %p1332_p6 }
 0x4ec   : > { %p1335_p10 = pnand %p1334_p8, %p1328_p5 }
 0x4ee   : > { %1338 = shalt.err (!%p1335_p10)
}
 0x4ef   : > { %s1339_s16 = scalar_lea.hbm %s1665_s3, 128  ;;  %s1343_s27 = scalar_lea.hbm %s1770_s1, 256 }
 0x4f0   : > { %p1340_p11 = scmp.ne.s32.totalorder %s1665_s3, %s1339_s16  ;;  %p1344_p0 = scmp.lt.u32.totalorder %s1665_s3, %s1770_s1 }
 0x4f1   : > { %p1345_p1 = scmp.lt.u32.totalorder %s1343_s27, %s1339_s16  ;;  %p1347_p4 = scmp.lt.u32.totalorder %s1339_s16, %s1665_s3 }
 0x4f2   : > { %p1341_p12 = pnand %p1340_p11, %p1533_p3 }
 0x4f3   : > { %p1346_p2 = por %p1345_p1, %p1344_p0 }
 0x4f4   : > { %p1342_p13 = pneg %p1341_p12 }
 0x4f5   : > { %p1348_p5 = por %p1347_p4, %p1346_p2 }
 0x4f7   : > { %p1349_p6 = pnand %p1348_p5, %p1342_p13 }
 0x4f9   : > { %1352 = shalt.err (!%p1349_p6)
}
 0x4fa   : > { %1242 = dma.vmem_to_hbm [thread:$0]  (%p1533_p3), %s969_s17, 128, %s1665_s3, %s954_s30  }
 0x4fb PF: > { %s1772_s12 = sld [smem:[#allocation12_spill]]  ;;  %s1773_s14 = sld [smem:[#allocation6_spill]] }
 0x501   : > { %p1248_p7 = scmp.ge.s32.totalorder %s1772_s12, 2  ;;  %s980_s28 = sand.u32 1, %s1773_s14  }
 0x502   : > { %s981_s29 = scalar_lea.sflag [#allocation4], %s980_s28 }
 0x503   : > { %p1245_p8 = pnand %p1248_p7, %p1543_p9 }
 0x505   : > { %1386 = dma.done.wait (!%p1245_p8), %s981_s29, 128  }
 0x506   : > { %1388 = vsyncadd (!%p1245_p8), %s981_s29, 4294967168  ;;  %s24_s24 = sadd.s32 1, %s1772_s12   ;;  %s1775_s17 = sld [smem:[#allocation7_spill]] }
 0x507   : > { %p21_p10 = scmp.ge.s32.totalorder %s24_s24, 10   ;;  %s1776_s18 = sld [smem:[#allocation8_spill]] }
 0x508   : > { %s1777_s19 = sld [smem:[#allocation17_spill]]  ;;  %s1778_s20 = sld [smem:[#allocation10_spill]] }
 0x509   : > { %s1779_s21 = sld [smem:[#allocation11_spill]]  ;;  %s1780_s22 = sld [smem:[#allocation13_spill]] }
 0x50a   : > { %s1781_s23 = sld [smem:[#allocation15_spill]]  ;;  %23 = sbr.rel (!%p21_p10) target bundleno = 10 (0xa), region = 134 }
 0x511   :  { %986 = vsyncpa [#allocation4], 1 }
 0x512   :  { %988 = vsyncpa [#allocation4 + $0x1], 1 }

</bundles_post_ra>
